<compile_context>
chip_gen: v7x
topology: tpu7x:2x2x1
jax: 0.10.0
libtpu: 0.0.40
codegen_flags: <defaults>
</compile_context>

<pallas_src>
import functools

import jax
import jax.numpy as jnp
from jax.experimental import pallas as pl
from jax.experimental.pallas import tpu as pltpu


def _round_up(a, b):
    return (a + b - 1) // b * b


def ct_kernel(beta_ref, x_ref, o_ref, *, coeff, threshold):
    # beta_ref: (1,) f32 scalar-prefetch parameter in SMEM.
    # x_ref / o_ref: (tr, cols) tiles in VMEM (last block may be partial).
    beta = beta_ref[0]
    one_minus_beta = 1.0 - beta
    inv_omb = 1.0 / one_minus_beta              # scalar, once per grid step
    beta_over_omb = beta * inv_omb
    c1 = (1.0 - coeff) * one_minus_beta         # folds (1-coeff)*(1-beta)

    x = x_ref[...].astype(jnp.float32)
    z = x * inv_omb                             # x / (1 - beta) with no vector divide
    sig = jax.nn.sigmoid(x * beta_over_omb)     # EUP
    softplus = jnp.log(1.0 + jnp.exp(z))        # EUP x2, matches torch.log(1+exp(.))
    # Select the branch-specific term first, then add the shared coeff*sig*x:
    # one fewer vector add than forming both full branches.  The untaken
    # branch's inf/NaN (exp overflow; 0*inf when coeff==1) is discarded by the
    # select, exactly like torch.where.
    sel = jnp.where(z <= threshold, c1 * softplus, (1.0 - coeff) * x)
    o_ref[...] = (coeff * sig * x + sel).astype(o_ref.dtype)


def _ct_jax(x, beta, coeff, threshold):
    """Plain-JAX elementwise CT; used only for a <1024-element ragged tail."""
    x32 = x.astype(jnp.float32)
    beta = jnp.asarray(beta, jnp.float32)
    omb = 1.0 - beta
    z = x32 / omb
    sig = jax.nn.sigmoid(beta * z)
    sel = jnp.where(z <= threshold,
                    (1.0 - coeff) * omb * jnp.log(1.0 + jnp.exp(z)),
                    (1.0 - coeff) * x32)
    return (coeff * sig * x32 + sel).astype(x.dtype)


def ct_forward(x, beta, coeff=0.5, threshold=20.0, *, tile_r=512):
    """CT activation. x: any-shape float array. beta: scalar, 0 <= beta < 1.

    tile_r=512 targets 2 MiB f32 blocks (~85% of HBM roofline per review).
    # TODO(synk): on v7x, tile_r=1024 (4 MiB blocks) amortizes per-step overhead
    # further; the >=2-grid-step clamp below keeps both TensorCores busy.
    """
    orig_shape = x.shape
    n = x.size
    if n == 0:
        return x

    x_flat = x.reshape(-1)                      # zero-copy for contiguous input
    beta_arr = jnp.asarray(beta, jnp.float32).reshape(1)

    # Pick a lane-dense width (multiple of 128) that divides n exactly if
    # possible, so no padding / slicing of the whole tensor is ever needed.
    cols = 0
    for c in (1024, 512, 256, 128):
        if n % c == 0:
            cols = c
            break
    if cols:
        n_main, tail = n, 0
    else:                                       # truly ragged: prefix + tiny tail
        cols = 1024
        n_main = (n // cols) * cols
        tail = n - n_main

    pieces = []
    if n_main > 0:
        rows = n_main // cols
        # Block rows: cap at ~tile_r*1024 elements per block, multiple of 8,
        # and keep >= 2 grid steps when rows allow (v7x: 2 TCs, axis "parallel").
        blk_elems = tile_r * 1024
        tr = min(_round_up(rows, 8), max(8, blk_elems // cols))
        if rows > 8:
            tr = min(tr, _round_up(pl.cdiv(rows, 2), 8))
        if tr > rows:          # tiny inputs: single full-array block (always legal)
            tr = rows
        grid = pl.cdiv(rows, tr)

        x2d = (x_flat if tail == 0 else x_flat[:n_main]).reshape(rows, cols)
        kernel = functools.partial(ct_kernel, coeff=float(coeff),
                                   threshold=float(threshold))
        grid_spec = pltpu.PrefetchScalarGridSpec(
            num_scalar_prefetch=1,              # beta lands in SMEM
            grid=(grid,),
            in_specs=[pl.BlockSpec((tr, cols), lambda i, beta_sp: (i, 0))],
            out_specs=pl.BlockSpec((tr, cols), lambda i, beta_sp: (i, 0)),
        )
        out2d = pl.pallas_call(
            kernel,
            out_shape=jax.ShapeDtypeStruct((rows, cols), x2d.dtype),
            grid_spec=grid_spec,
            compiler_params=pltpu.CompilerParams(
                dimension_semantics=("parallel",),   # shards across 2 TCs on v7x
                vmem_limit_bytes=32 * 1024 * 1024,   # 2 MiB blocks + temps fit v5e too
            ),
        )(beta_arr, x2d)
        pieces.append(out2d.reshape(-1))

    if tail:
        # <1024-element remainder: a tiny separate op per the perf review
        # (avoids padding + re-slicing the whole tensor through HBM).
        pieces.append(_ct_jax(x_flat[n_main:], beta_arr[0], coeff, threshold))

    out_flat = pieces[0] if len(pieces) == 1 else jnp.concatenate(pieces)
    return out_flat.reshape(orig_shape)


def ct_reference(x, beta, coeff=0.5, threshold=20.0):
    x = x.astype(jnp.float32)
    one_minus_beta = 1.0 - beta
    z = x / one_minus_beta
    sig = jax.nn.sigmoid(beta * z)
    normal_ver = coeff * sig * x + (1.0 - coeff) * jnp.log(1.0 + jnp.exp(z)) * one_minus_beta
    overflow_ver = coeff * sig * x + (1.0 - coeff) * x
    return jnp.where(z <= threshold, normal_ver, overflow_ver)


if __name__ == "__main__":
    key = jax.random.PRNGKey(0)

    # CT.__init__ defaults (trainable=False) with a non-trivial beta.
    beta = 0.3
    coeff = 0.5
    threshold = 20.0

    # 1) Small NCHW activation (2048 elems, multiple of 1024 -> no pad / no tail),
    #    scaled so both branches (z <= threshold and z > threshold) are hit.
    x1 = jax.random.normal(key, (2, 4, 16, 16), dtype=jnp.float32) * 5.0
    out1 = jax.block_until_ready(ct_forward(x1, beta, coeff, threshold))
    ref1 = ct_reference(x1, beta, coeff, threshold)
    assert out1.shape == x1.shape and out1.dtype == x1.dtype
    assert jnp.allclose(out1, ref1, atol=3e-5, rtol=1e-5), "mismatch vs reference (shape 1)"

    # 2) Ragged shape (1938 elems, not a multiple of 128): prefix kernel + JAX tail.
    x2 = jax.random.normal(jax.random.PRNGKey(1), (2, 3, 17, 19), dtype=jnp.float32) * 5.0
    out2 = jax.block_until_ready(ct_forward(x2, beta, coeff, threshold))
    ref2 = ct_reference(x2, beta, coeff, threshold)
    assert out2.shape == x2.shape and out2.dtype == x2.dtype
    assert jnp.allclose(out2, ref2, atol=3e-5, rtol=1e-5), "mismatch vs reference (shape 2)"

    # 3) bf16 I/O (multi-step grid; halves HBM traffic vs f32 on v5e/v6e).
    x3 = (jax.random.normal(jax.random.PRNGKey(2), (4, 8, 32, 32), dtype=jnp.float32) * 5.0
          ).astype(jnp.bfloat16)
    out3 = jax.block_until_ready(ct_forward(x3, beta, coeff, threshold))
    ref3 = ct_reference(x3, beta, coeff, threshold)
    assert out3.shape == x3.shape and out3.dtype == x3.dtype
    assert jnp.allclose(out3.astype(jnp.float32), ref3, atol=2e-2, rtol=2e-2), \
        "mismatch vs reference (bf16)"

    print("KERNEL_OK")
</pallas_src>

<mosaic_0001>
module attributes {stable_mosaic.version = 11 : i64} {
  func.func @ct_kernel(%arg0: i32, %arg1: memref<1xf32, #tpu.memory_space<smem>>, %arg2: memref<2x1024xf32, #tpu.memory_space<vmem>>, %arg3: memref<2x1024xf32, #tpu.memory_space<vmem>>) attributes {dimension_semantics = [#tpu.dimension_semantics<parallel>], iteration_bounds = array<i64: 1>, scalar_prefetch = 1 : i64, scratch_operands = 0 : i64, tpu.core_type = #tpu.core_type<tc>, window_params = [{transform_indices = @transform_0, window_bounds = array<i64: 2, 1024>}, {transform_indices = @transform_1, window_bounds = array<i64: 2, 1024>}]} {
    %c0 = arith.constant 0 : index
    %0 = memref.load %arg1[%c0] : memref<1xf32, #tpu.memory_space<smem>>
    %cst = arith.constant 1.000000e+00 : f32
    %1 = arith.subf %cst, %0 : f32
    %cst_0 = arith.constant 1.000000e+00 : f32
    %2 = arith.divf %cst_0, %1 : f32
    %3 = arith.mulf %0, %2 : f32
    %cst_1 = arith.constant 5.000000e-01 : f32
    %4 = arith.mulf %cst_1, %1 : f32
    %c0_2 = arith.constant 0 : index
    %c0_3 = arith.constant 0 : index
    %5 = vector.load %arg2[%c0_2, %c0_3] : memref<2x1024xf32, #tpu.memory_space<vmem>>, vector<2x1024xf32>
    %6 = vector.broadcast %2 : f32 to vector<2x1024xf32>
    %7 = arith.mulf %5, %6 : vector<2x1024xf32>
    %8 = vector.broadcast %3 : f32 to vector<2x1024xf32>
    %9 = arith.mulf %5, %8 : vector<2x1024xf32>
    %10 = arith.negf %9 : vector<2x1024xf32>
    %11 = math.exp %10 : vector<2x1024xf32>
    %cst_4 = arith.constant 1.000000e+00 : f32
    %12 = vector.broadcast %cst_4 : f32 to vector<2x1024xf32>
    %13 = arith.addf %12, %11 : vector<2x1024xf32>
    %14 = arith.divf %12, %13 : vector<2x1024xf32>
    %15 = math.exp %7 : vector<2x1024xf32>
    %cst_5 = arith.constant 1.000000e+00 : f32
    %16 = vector.broadcast %cst_5 : f32 to vector<2x1024xf32>
    %17 = arith.addf %16, %15 : vector<2x1024xf32>
    %18 = math.log %17 : vector<2x1024xf32>
    %cst_6 = arith.constant 2.000000e+01 : f32
    %19 = vector.broadcast %cst_6 : f32 to vector<2x1024xf32>
    %20 = arith.cmpf ole, %7, %19 : vector<2x1024xf32>
    %21 = vector.broadcast %4 : f32 to vector<2x1024xf32>
    %22 = arith.mulf %21, %18 : vector<2x1024xf32>
    %cst_7 = arith.constant 5.000000e-01 : f32
    %23 = vector.broadcast %cst_7 : f32 to vector<2x1024xf32>
    %24 = arith.mulf %23, %5 : vector<2x1024xf32>
    %25 = arith.select %20, %22, %24 : vector<2x1024xi1>, vector<2x1024xf32>
    %cst_8 = arith.constant 5.000000e-01 : f32
    %26 = vector.broadcast %cst_8 : f32 to vector<2x1024xf32>
    %27 = arith.mulf %26, %14 : vector<2x1024xf32>
    %28 = arith.mulf %27, %5 : vector<2x1024xf32>
    %29 = arith.addf %28, %25 : vector<2x1024xf32>
    %c0_9 = arith.constant 0 : index
    %c0_10 = arith.constant 0 : index
    %30 = vector.load %arg3[%c0_9, %c0_10] : memref<2x1024xf32, #tpu.memory_space<vmem>>, vector<2x1024xf32>
    tpu.vector_store %arg3[%c0_9, %c0_10], %29 {strides = array<i32>} : memref<2x1024xf32, #tpu.memory_space<vmem>>, vector<2x1024xf32>,
    return
  }
  func.func @transform_0(%arg0: i32, %arg1: memref<1xf32, #tpu.memory_space<smem>>) -> (i32, i32) {
    %c0_i32 = arith.constant 0 : i32
    %c0_i32_0 = arith.constant 0 : i32
    return %arg0, %c0_i32 : i32, i32
  }
  func.func @transform_1(%arg0: i32, %arg1: memref<1xf32, #tpu.memory_space<smem>>) -> (i32, i32) {
    %c0_i32 = arith.constant 0 : i32
    %c0_i32_0 = arith.constant 0 : i32
    return %arg0, %c0_i32 : i32, i32
  }
}

</mosaic_0001>

<bundles_post_ra>
// kernel: tpu_custom_call.1
= control target key start
LH: loop header
LB: loop body
LE: loop exit
PB: predicated region body
PF: predicated region fallthrough
CT: control target
= control target key end

     0   :  { %8 = vsyncpa [#allocation5], 0  ;;  %s219_s0 = inlined_call_operand.<no memory space> [shape: f32[1], index: 0, kind: input, shape index: {}]   ;;  %s220_s1 = inlined_call_operand.hbm [shape: f32[2,1024], index: 1, kind: input, shape index: {}]   ;;  %s221_s2 = inlined_call_operand.hbm [shape: f32[2,1024], index: 2, kind: output, shape index: {}]  }
   0x1   :  { %9 = vsyncpa [#allocation6], 0  ;;  %s164_s9 = smov [#allocation4]   ;;  %s116_s13 = scalar_lea.hbm %s220_s1, 256 }
   0x2   :  { %s16_s10 = sshll.u32 %s164_s9, 4  ;;  %p117_p0 = scmp.ne.s32.totalorder %s220_s1, %s116_s13  ;;  %s17_s10 = int_to_ptr.vmem [resolvable:$true] %s16_s10 }
   0x3   :  { %p120_p1 = scmp.lt.u32.totalorder %s116_s13, %s220_s1 }
   0x5   :  { %p122_p2 = pnand %p120_p1, %p117_p0 }
   0x7   :  { %125 = shalt.err (!%p122_p2)
}
   0x8   :  { %s126_s18 = scalar_lea.vmem %s17_s10, 256  ;;  %p131_p4 = scmp.lt.s32.totalorder %s17_s10, %s17_s10 }
   0x9   :  { %p127_p3 = scmp.ne.s32.totalorder %s17_s10, %s126_s18  ;;  %p132_p5 = scmp.lt.s32.totalorder %s126_s18, %s126_s18 }
   0xb   :  { %p133_p6 = por %p132_p5, %p131_p4 }
   0xd   :  { %p134_p7 = pnand %p133_p6, %p127_p3 }
   0xf   :  { %137 = shalt.err (!%p134_p7)
}
  0x10   :  { %19 = dma.hbm_to_vmem [thread:$0]  %s220_s1, 256, %s17_s10, [#allocation5]  }
  0x11   :  { %s24_s23 = ssub.f32 1.0, %s219_s0 }
  0x12   :  { %160 = dma.done.wait [#allocation5], 256  }
  0x13   :  { %161 = vsyncadd [#allocation5], 4294967040  ;;  %v25_v0 = vstv %s24_s23  ;;  %v30_v2 = vld [vmem:[#allocation4] sm:$0xff]  ;;  %v31_v3 = vld [vmem:[#allocation4 + $0x8] sm:$0xff]  ;;  %s29_s3 = smul.f32 0.5, %s24_s23  ;;  %s165_s4 = smov [#allocation7]  }
  0x14   :  { %98 = vrcp.f32 %v25_v0  ;;  %v65_v26 = vmul.f32 0.5, %v30_v2  ;;  %v66_v29 = vmul.f32 0.5, %v31_v3 }
  0x15   :  { %v62_v23 = vstv %s29_s3 }
  0x1e   :  { %v99_v1 = vpop.eup %98 }
  0x1f   :  { %94 = vpush %v99_v1 }
  0x50   :  { %s95_s26 = spop %94 }
  0x51   :  { %s28_s1 = smul.f32 %s95_s26, %s219_s0  ;;  %v32_v4 = vstv %s95_s26  ;;  %s83_s0 = sshll.u32 %s165_s4, 4  ;;  %s84_s0 = int_to_ptr.vmem [resolvable:$true] %s83_s0 }
  0x52   :  { %v33_v5 = vmul.f32 %v32_v4, %v30_v2  ;;  %v34_v6 = vmul.f32 %v32_v4, %v31_v3  ;;  %s138_s5 = scalar_lea.vmem %s84_s0, 256  ;;  %p143_p9 = scmp.lt.s32.totalorder %s84_s0, %s84_s0 }
  0x53   :  { %v35_v7 = vstv %s28_s1  ;;  %p139_p8 = scmp.ne.s32.totalorder %s84_s0, %s138_s5  ;;  %p144_p10 = scmp.lt.s32.totalorder %s138_s5, %s138_s5 }
  0x54   :  { %v36_v8 = vmul.f32 %v35_v7, %v30_v2  ;;  %v37_v9 = vmul.f32 %v35_v7, %v31_v3  ;;  %v50_v10 = vmul.f32 1.442695, %v33_v5  ;;  %v52_v11 = vmul.f32 1.442695, %v34_v6 }
  0x55   :  { %vm60_vm0 = vcmp.le.f32.partialorder %v33_v5, 20.0  ;;  %vm61_vm1 = vcmp.le.f32.partialorder %v34_v6, 20.0  ;;  %p145_p11 = por %p144_p10, %p143_p9 }
  0x56   :  { %v92_v12 = vmul.f32 -1.442695, %v36_v8  ;;  %v93_v13 = vmul.f32 -1.442695, %v37_v9  ;;  %100 = vpow2.f32 %v50_v10 }
  0x57   :  { %102 = vpow2.f32 %v52_v11  ;;  %p146_p12 = pnand %p145_p11, %p139_p8 }
  0x58   :  { %104 = vpow2.f32 %v92_v12 }
  0x59   :  { %106 = vpow2.f32 %v93_v13 }
  0x60   :  { %v101_v14 = vpop.eup %100 }
  0x61   :  { %v103_v15 = vpop.eup %102  ;;  %v54_v16 = vadd.f32 1.0, %v101_v14 }
  0x62   :  { %v105_v17 = vpop.eup %104  ;;  %v55_v18 = vadd.f32 1.0, %v103_v15 }
  0x63   :  { %v107_v19 = vpop.eup %106  ;;  %v44_v20 = vadd.f32 1.0, %v105_v17  ;;  %108 = vlog2.f32 %v54_v16 }
  0x64   :  { %v45_v21 = vadd.f32 1.0, %v107_v19  ;;  %110 = vlog2.f32 %v55_v18 }
  0x65   :  { %112 = vrcp.f32 %v44_v20 }
  0x66   :  { %114 = vrcp.f32 %v45_v21 }
  0x6d   :  { %v109_v22 = vpop.eup %108 }
  0x6e   :  { %v111_v24 = vpop.eup %110  ;;  %v57_v25 = vmul.f32 0.6931472, %v109_v22 }
  0x6f   :  { %v113_v27 = vpop.eup %112  ;;  %v59_v28 = vmul.f32 0.6931472, %v111_v24 }
  0x70   :  { %v115_v30 = vpop.eup %114  ;;  %v63_v31 = vmul.f32 %v62_v23, %v57_v25  ;;  %v69_v32 = vmul.f32 0.5, %v113_v27 }
  0x71   :  { %v64_v33 = vmul.f32 %v62_v23, %v59_v28  ;;  %v70_v34 = vmul.f32 0.5, %v115_v30 }
  0x72   :  { %v67_v35 = vsel %vm60_vm0, %v63_v31, %v65_v26  ;;  %v71_v36 = vmul.f32 %v69_v32, %v30_v2 }
  0x73   :  { %v68_v37 = vsel %vm61_vm1, %v64_v33, %v66_v29  ;;  %v72_v38 = vmul.f32 %v70_v34, %v31_v3 }
  0x74   :  { %v73_v39 = vadd.f32 %v71_v36, %v67_v35 }
  0x75   :  { %v74_v40 = vadd.f32 %v72_v38, %v68_v37 }
  0x76   :  { %75 = vst [vmem:[#allocation7] sm:$0xff] %v73_v39 }
  0x77   :  { %76 = vst [vmem:[#allocation7 + $0x8] sm:$0xff] %v74_v40 }
  0x78   :  { %149 = shalt.err (!%p146_p12)
}
  0x79   :  { %s150_s8 = scalar_lea.hbm %s221_s2, 256 }
  0x7a   :  { %p151_p13 = scmp.ne.s32.totalorder %s221_s2, %s150_s8  ;;  %p154_p0 = scmp.lt.u32.totalorder %s150_s8, %s221_s2 }
  0x7c   :  { %p156_p1 = pnand %p154_p0, %p151_p13 }
  0x7e   :  { %159 = shalt.err (!%p156_p1)
}
  0x7f   :  { %86 = dma.vmem_to_hbm [thread:$0]  %s84_s0, 256, %s221_s2, [#allocation6]  }
  0x80   :  { %162 = dma.done.wait [#allocation6], 256  }
  0x81   :  { %163 = vsyncadd [#allocation6], 4294967040 }
  0x82   :  { %90 = vsyncpa [#allocation5], 1 }
  0x83   :  { %91 = vsyncpa [#allocation6], 1 }

</bundles_post_ra>
